<compile_context>
chip_gen: v7x
topology: tpu7x:2x2x1
jax: 0.10.0
libtpu: 0.0.40
codegen_flags: <defaults>
</compile_context>

<pallas_src>
import jax
import jax.numpy as jnp
from jax.experimental import pallas as pl
from jax.experimental.pallas import tpu as pltpu

H = 32       # hidden_size
L = 8        # max_length
V = 64       # output_size (vocab)
LANES = 128

# Row offsets inside the per-call packed weight slab (all multiples of 8).
R_ATTN = 0                  # attention  [emb | h]              (2H,  L)  rows   0: 64
R_COMB = R_ATTN + 2 * H     # combine-fold [emb | attn_w]       (H+L, H)  rows  64:104
R_GRU = R_COMB + H + L      # fused GRU [x | h] -> [r|z|in|hn]  (2H, 4H)  rows 104:168
R_OUT = R_GRU + 2 * H       # out projection                    (H,   V)  rows 168:200
R_TOTAL = R_OUT + H         # 200 rows

B_ATTN, B_COMB, B_GRU, B_OUT, B_H0 = 0, 1, 2, 3, 4   # bias-slab rows
B_ROWS = 8

PAD_OUT = LANES - (V + H + L)   # 24 zero lanes in each packed output row


def _make_kernel(t_steps, t_pad):
    """Build the kernel for a static number of decode steps (fully unrolled)."""

    def kernel(emb_ref, w_ref, b_ref, out_ref):
        h = b_ref[B_H0:B_H0 + 1, 0:H]                       # (1, H) initial hidden
        h_rows, a_rows = [], []

        for t in range(t_steps):                            # static unroll: T is tiny
            emb = emb_ref[t:t + 1, 0:H]                     # (1, H) pre-gathered embedding

            # --- attention: softmax(Linear_{2H->L}([emb, h])) as ONE dot ----------
            xh = jnp.concatenate([emb, h], axis=1)          # (1, 2H)
            a_full = (jnp.dot(xh, w_ref[R_ATTN:R_ATTN + 2 * H, :],
                              preferred_element_type=jnp.float32)
                      + b_ref[B_ATTN:B_ATTN + 1, :])        # (1, 128); lanes 0:L valid
            logits = a_full[:, 0:L]
            m = jnp.max(logits, axis=1, keepdims=True)
            e = jnp.exp(logits - m)
            attn_w = e / jnp.sum(e, axis=1, keepdims=True)  # (1, L)  exact f32

            # --- combine + relu; encoder_outputs pre-folded into the weights ------
            ea = jnp.concatenate([emb, attn_w], axis=1)     # (1, H+L)
            c_full = (jnp.dot(ea, w_ref[R_COMB:R_COMB + H + L, :],
                              preferred_element_type=jnp.float32)
                      + b_ref[B_COMB:B_COMB + 1, :])
            x = jnp.maximum(c_full[:, 0:H], 0.0)            # (1, H)

            # --- GRU cell: ONE fused dot -> lanes [r_pre | z_pre | gi_n | gh_n] ---
            xh2 = jnp.concatenate([x, h], axis=1)           # (1, 2H)
            g = (jnp.dot(xh2, w_ref[R_GRU:R_GRU + 2 * H, :],
                         preferred_element_type=jnp.float32)
                 + b_ref[B_GRU:B_GRU + 1, :])               # (1, 128)
            r = jax.nn.sigmoid(g[:, 0:H])
            z = jax.nn.sigmoid(g[:, H:2 * H])
            n = jnp.tanh(g[:, 2 * H:3 * H] + r * g[:, 3 * H:4 * H])
            h = (1.0 - z) * n + z * h                       # (1, H)

            h_rows.append(h)
            a_rows.append(attn_w)

        h_all = jnp.concatenate(h_rows, axis=0)             # (T, H)
        a_all = jnp.concatenate(a_rows, axis=0)             # (T, L)

        # --- output projection + log_softmax, batched over the whole decode -------
        o_full = (jnp.dot(h_all, w_ref[R_OUT:R_OUT + H, :],
                          preferred_element_type=jnp.float32)
                  + b_ref[B_OUT:B_OUT + 1, :])              # (T, 128); lanes 0:V valid
        logits = o_full[:, 0:V]
        m2 = jnp.max(logits, axis=1, keepdims=True)
        sh = logits - m2
        logp = sh - jnp.log(jnp.sum(jnp.exp(sh), axis=1, keepdims=True))   # (T, V)

        # --- single lane-dense packed slab: [logp | h | attn_w | zero pad] --------
        packed = jnp.concatenate(
            [logp, h_all, a_all, jnp.zeros((t_steps, PAD_OUT), jnp.float32)], axis=1)
        if t_pad > t_steps:
            packed = jnp.concatenate(
                [packed, jnp.zeros((t_pad - t_steps, LANES), jnp.float32)], axis=0)
        out_ref[...] = packed                               # one dense (T_pad, 128) store

    return kernel


def init_params(key):
    """Logical parameters with PyTorch-default-like uniform ranges, in [in, out]
    matmul layout (cat weights stacked along rows; GRU gate weights stacked along
    columns in r, z, n order)."""
    ks = jax.random.split(key, 12)
    u = lambda k, shape, bound: jax.random.uniform(
        k, shape, jnp.float32, minval=-bound, maxval=bound)
    kH = 1.0 / jnp.sqrt(H)
    k2H = 1.0 / jnp.sqrt(2.0 * H)
    p = {}
    p["embedding"] = jax.random.normal(ks[0], (V, H), jnp.float32)
    p["w_attn"] = u(ks[1], (2 * H, L), k2H)     # rows: [embedded | hidden]
    p["b_attn"] = u(ks[2], (L,), k2H)
    p["w_comb"] = u(ks[3], (2 * H, H), k2H)     # rows: [embedded | attn_applied]
    p["b_comb"] = u(ks[4], (H,), k2H)
    p["w_gx"] = u(ks[5], (H, 3 * H), kH)        # cols: [r | z | n]
    p["w_gh"] = u(ks[6], (H, 3 * H), kH)
    p["b_gx"] = u(ks[7], (3 * H,), kH)
    p["b_gh"] = u(ks[8], (3 * H,), kH)
    p["w_out"] = u(ks[9], (H, V), kH)
    p["b_out"] = u(ks[10], (V,), kH)
    return p


@jax.jit
def attn_decoder_forward(params, tokens, hidden, encoder_outputs):
    """tokens: int32 (T,); hidden: (1,1,H); encoder_outputs: (L,H).
    Runs T teacher-forced decode steps in one kernel dispatch with per-step math
    exactly matching the PyTorch module.  Returns (log_probs (T,V),
    final hidden (1,1,H), attention weights (T,L))."""
    tokens = jnp.asarray(tokens, jnp.int32).reshape(-1)
    T = tokens.shape[0]
    T_pad = max(8, -(-T // 8) * 8)
    enc = encoder_outputs.astype(jnp.float32)

    def padw(a):  # pad last dim to 128 lanes
        a = a.astype(jnp.float32)
        return jnp.pad(a, ((0, 0), (0, LANES - a.shape[-1])))

    def padb(v):  # 1-D bias -> (1, 128)
        v = v.reshape(1, -1).astype(jnp.float32)
        return jnp.pad(v, ((0, 0), (0, LANES - v.shape[-1])))

    # Pre-gather all T embeddings (one XLA gather, inside the same jit).
    emb = params["embedding"][tokens]                                  # (T, H)
    emb_pad = jnp.pad(padw(emb), ((0, T_pad - T), (0, 0)))             # (T_pad, 128)

    # Fold encoder_outputs into the combine weights:
    # [emb | attn_w] @ [[W_comb_top], [enc @ W_comb_bot]] == [emb | attn_w @ enc] @ W_comb
    w_comb_fold = jnp.concatenate(
        [params["w_comb"][:H], enc @ params["w_comb"][H:]], axis=0)    # (H+L, H)

    # Fuse the two GRU dots into one (2H, 4H) block; lanes = [r | z | gi_n | gh_n].
    zeros_hh = jnp.zeros((H, H), jnp.float32)
    w_gru_x = jnp.concatenate(
        [params["w_gx"][:, 0:H], params["w_gx"][:, H:2 * H],
         params["w_gx"][:, 2 * H:3 * H], zeros_hh], axis=1)            # (H, 4H)
    w_gru_h = jnp.concatenate(
        [params["w_gh"][:, 0:H], params["w_gh"][:, H:2 * H],
         zeros_hh, params["w_gh"][:, 2 * H:3 * H]], axis=1)            # (H, 4H)
    w_gru = jnp.concatenate([w_gru_x, w_gru_h], axis=0)                # (2H, 4H = 128)
    b_gru = jnp.concatenate(
        [params["b_gx"][0:H] + params["b_gh"][0:H],
         params["b_gx"][H:2 * H] + params["b_gh"][H:2 * H],
         params["b_gx"][2 * H:3 * H], params["b_gh"][2 * H:3 * H]])    # (4H,)

    # One lane-dense weight slab + one bias/h0 slab -> 3 input DMAs total.
    w_slab = jnp.concatenate(
        [padw(params["w_attn"]), padw(w_comb_fold),
         w_gru.astype(jnp.float32), padw(params["w_out"])], axis=0)    # (R_TOTAL, 128)
    b_slab = jnp.concatenate(
        [padb(params["b_attn"]), padb(params["b_comb"]), padb(b_gru),
         padb(params["b_out"]), padb(hidden.reshape(1, H)),
         jnp.zeros((B_ROWS - 5, LANES), jnp.float32)], axis=0)         # (8, 128)

    out = pl.pallas_call(
        _make_kernel(T, T_pad),
        out_shape=jax.ShapeDtypeStruct((T_pad, LANES), jnp.float32),
        grid=(1,),                                                     # single dispatch
        in_specs=[
            pl.BlockSpec((T_pad, LANES), lambda i: (0, 0)),            # embeddings
            pl.BlockSpec((R_TOTAL, LANES), lambda i: (0, 0)),          # weight slab
            pl.BlockSpec((B_ROWS, LANES), lambda i: (0, 0)),           # biases + h0
        ],
        out_specs=pl.BlockSpec((T_pad, LANES), lambda i: (0, 0)),      # packed results
        compiler_params=pltpu.CompilerParams(
            dimension_semantics=("arbitrary",)),
    )(emb_pad, w_slab, b_slab)

    logp = out[:T, 0:V]                  # (T, V)
    h_all = out[:T, V:V + H]             # (T, H) per-step hidden
    attn_w = out[:T, V + H:V + H + L]    # (T, L)
    return logp, h_all[-1].reshape(1, 1, H), attn_w


def reference_forward(p, tokens, hidden, encoder_outputs):
    """Pure-JAX reference with identical per-step math, for verification."""
    tokens = jnp.asarray(tokens, jnp.int32).reshape(-1)
    h = hidden.reshape(1, H)
    logps, attns = [], []
    for t in range(tokens.shape[0]):
        emb = p["embedding"][tokens[t]].reshape(1, H)
        xh = jnp.concatenate([emb, h], axis=1)
        attn_w = jax.nn.softmax(xh @ p["w_attn"] + p["b_attn"], axis=1)
        attn_applied = attn_w @ encoder_outputs
        ea = jnp.concatenate([emb, attn_applied], axis=1)
        x = jax.nn.relu(ea @ p["w_comb"] + p["b_comb"])
        gi = x @ p["w_gx"] + p["b_gx"]
        gh = h @ p["w_gh"] + p["b_gh"]
        r = jax.nn.sigmoid(gi[:, 0:H] + gh[:, 0:H])
        z = jax.nn.sigmoid(gi[:, H:2 * H] + gh[:, H:2 * H])
        n = jnp.tanh(gi[:, 2 * H:] + r * gh[:, 2 * H:])
        h = (1.0 - z) * n + z * h
        logp = jax.nn.log_softmax(h @ p["w_out"] + p["b_out"], axis=1)
        logps.append(logp)
        attns.append(attn_w)
    return (jnp.concatenate(logps, axis=0), h.reshape(1, 1, H),
            jnp.concatenate(attns, axis=0))


if __name__ == "__main__":
    key = jax.random.PRNGKey(0)
    k_param, k_enc, k_hid = jax.random.split(key, 3)

    params = init_params(k_param)

    tokens = jnp.array([5, 17, 3, 42], dtype=jnp.int32)           # T=4 decode steps
    hidden = jax.random.normal(k_hid, (1, 1, H), jnp.float32)     # initial hidden
    encoder_outputs = jax.random.normal(k_enc, (L, H), jnp.float32)

    logp, h_new, attn_w = attn_decoder_forward(params, tokens, hidden, encoder_outputs)
    jax.block_until_ready((logp, h_new, attn_w))

    logp_r, h_r, attn_r = reference_forward(params, tokens, hidden, encoder_outputs)
    T = tokens.shape[0]
    assert logp.shape == (T, V) and h_new.shape == (1, 1, H) and attn_w.shape == (T, L)
    assert jnp.allclose(logp, logp_r, atol=1e-4), "log_softmax output mismatch"
    assert jnp.allclose(h_new, h_r, atol=1e-4), "hidden state mismatch"
    assert jnp.allclose(attn_w, attn_r, atol=1e-4), "attention weights mismatch"

    print("KERNEL_OK")
</pallas_src>

<mosaic_0001>
module attributes {stable_mosaic.version = 11 : i64} {
  func.func @kernel(%arg0: i32, %arg1: memref<8x128xf32, #tpu.memory_space<vmem>>, %arg2: memref<200x128xf32, #tpu.memory_space<vmem>>, %arg3: memref<8x128xf32, #tpu.memory_space<vmem>>, %arg4: memref<8x128xf32, #tpu.memory_space<vmem>>) attributes {dimension_semantics = [#tpu.dimension_semantics<arbitrary>], iteration_bounds = array<i64: 1>, scalar_prefetch = 0 : i64, scratch_operands = 0 : i64, tpu.core_type = #tpu.core_type<tc>, window_params = [{pipeline_mode = #tpu.pipeline_mode<synchronous>, transform_indices = @transform_0, window_bounds = array<i64: 8, 128>}, {pipeline_mode = #tpu.pipeline_mode<synchronous>, transform_indices = @transform_1, window_bounds = array<i64: 200, 128>}, {pipeline_mode = #tpu.pipeline_mode<synchronous>, transform_indices = @transform_2, window_bounds = array<i64: 8, 128>}, {pipeline_mode = #tpu.pipeline_mode<synchronous>, transform_indices = @transform_3, window_bounds = array<i64: 8, 128>}]} {
    %c4 = arith.constant 4 : index
    %c0 = arith.constant 0 : index
    %0 = vector.load %arg3[%c4, %c0] : memref<8x128xf32, #tpu.memory_space<vmem>>, vector<1x32xf32>
    %c0_0 = arith.constant 0 : index
    %c0_1 = arith.constant 0 : index
    %1 = vector.load %arg1[%c0_0, %c0_1] : memref<8x128xf32, #tpu.memory_space<vmem>>, vector<1x32xf32>
    %2 = tpu.concatenate %1, %0 in 1 : vector<1x32xf32>, vector<1x32xf32> -> vector<1x64xf32>
    %c0_2 = arith.constant 0 : index
    %c0_3 = arith.constant 0 : index
    %3 = vector.load %arg2[%c0_2, %c0_3] : memref<200x128xf32, #tpu.memory_space<vmem>>, vector<64x128xf32>
    %cst = arith.constant dense<0.000000e+00> : vector<1x128xf32>
    %4 = tpu.matmul %2, %3, %cst {dimension_numbers = #tpu.dot_dimension_numbers<[1], [0], [0], [1], [0, 0, 1, 1], [], []>} : vector<1x64xf32>, vector<64x128xf32>, vector<1x128xf32> -> vector<1x128xf32>
    %c0_4 = arith.constant 0 : index
    %c0_5 = arith.constant 0 : index
    %5 = vector.load %arg3[%c0_4, %c0_5] : memref<8x128xf32, #tpu.memory_space<vmem>>, vector<1x128xf32>
    %6 = arith.addf %4, %5 : vector<1x128xf32>
    %7 = vector.extract_strided_slice %6 {offsets = [0, 0], sizes = [1, 8], strides = [1, 1]} : vector<1x128xf32> to vector<1x8xf32>
    %cst_6 = arith.constant dense<0xFF800000> : vector<1xf32>
    %8 = vector.multi_reduction <maximumf>, %7, %cst_6 [1] : vector<1x8xf32> to vector<1xf32>
    %9 = vector.shape_cast %8 : vector<1xf32> to vector<1x1xf32>
    %10 = vector.broadcast %9 : vector<1x1xf32> to vector<1x8xf32>
    %11 = arith.subf %7, %10 : vector<1x8xf32>
    %12 = math.exp %11 : vector<1x8xf32>
    %cst_7 = arith.constant dense<0.000000e+00> : vector<1xf32>
    %13 = vector.multi_reduction <add>, %12, %cst_7 [1] : vector<1x8xf32> to vector<1xf32>
    %14 = vector.shape_cast %13 : vector<1xf32> to vector<1x1xf32>
    %15 = vector.broadcast %14 : vector<1x1xf32> to vector<1x8xf32>
    %16 = arith.divf %12, %15 : vector<1x8xf32>
    %17 = tpu.concatenate %1, %16 in 1 : vector<1x32xf32>, vector<1x8xf32> -> vector<1x40xf32>
    %c64 = arith.constant 64 : index
    %c0_8 = arith.constant 0 : index
    %18 = vector.load %arg2[%c64, %c0_8] : memref<200x128xf32, #tpu.memory_space<vmem>>, vector<40x128xf32>
    %cst_9 = arith.constant dense<0.000000e+00> : vector<1x128xf32>
    %19 = tpu.matmul %17, %18, %cst_9 {dimension_numbers = #tpu.dot_dimension_numbers<[1], [0], [0], [1], [0, 0, 1, 1], [], []>} : vector<1x40xf32>, vector<40x128xf32>, vector<1x128xf32> -> vector<1x128xf32>
    %c1 = arith.constant 1 : index
    %c0_10 = arith.constant 0 : index
    %20 = vector.load %arg3[%c1, %c0_10] : memref<8x128xf32, #tpu.memory_space<vmem>>, vector<1x128xf32>
    %21 = arith.addf %19, %20 : vector<1x128xf32>
    %22 = vector.extract_strided_slice %21 {offsets = [0, 0], sizes = [1, 32], strides = [1, 1]} : vector<1x128xf32> to vector<1x32xf32>
    %cst_11 = arith.constant 0.000000e+00 : f32
    %23 = vector.broadcast %cst_11 : f32 to vector<1x32xf32>
    %24 = arith.maximumf %22, %23 : vector<1x32xf32>
    %25 = tpu.concatenate %24, %0 in 1 : vector<1x32xf32>, vector<1x32xf32> -> vector<1x64xf32>
    %c104 = arith.constant 104 : index
    %c0_12 = arith.constant 0 : index
    %26 = vector.load %arg2[%c104, %c0_12] : memref<200x128xf32, #tpu.memory_space<vmem>>, vector<64x128xf32>
    %cst_13 = arith.constant dense<0.000000e+00> : vector<1x128xf32>
    %27 = tpu.matmul %25, %26, %cst_13 {dimension_numbers = #tpu.dot_dimension_numbers<[1], [0], [0], [1], [0, 0, 1, 1], [], []>} : vector<1x64xf32>, vector<64x128xf32>, vector<1x128xf32> -> vector<1x128xf32>
    %c2 = arith.constant 2 : index
    %c0_14 = arith.constant 0 : index
    %28 = vector.load %arg3[%c2, %c0_14] : memref<8x128xf32, #tpu.memory_space<vmem>>, vector<1x128xf32>
    %29 = arith.addf %27, %28 : vector<1x128xf32>
    %30 = vector.extract_strided_slice %29 {offsets = [0, 0], sizes = [1, 32], strides = [1, 1]} : vector<1x128xf32> to vector<1x32xf32>
    %31 = arith.negf %30 : vector<1x32xf32>
    %32 = math.exp %31 : vector<1x32xf32>
    %cst_15 = arith.constant 1.000000e+00 : f32
    %33 = vector.broadcast %cst_15 : f32 to vector<1x32xf32>
    %34 = arith.addf %33, %32 : vector<1x32xf32>
    %35 = arith.divf %33, %34 : vector<1x32xf32>
    %36 = vector.extract_strided_slice %29 {offsets = [0, 32], sizes = [1, 32], strides = [1, 1]} : vector<1x128xf32> to vector<1x32xf32>
    %37 = arith.negf %36 : vector<1x32xf32>
    %38 = math.exp %37 : vector<1x32xf32>
    %cst_16 = arith.constant 1.000000e+00 : f32
    %39 = vector.broadcast %cst_16 : f32 to vector<1x32xf32>
    %40 = arith.addf %39, %38 : vector<1x32xf32>
    %41 = arith.divf %39, %40 : vector<1x32xf32>
    %42 = vector.extract_strided_slice %29 {offsets = [0, 64], sizes = [1, 32], strides = [1, 1]} : vector<1x128xf32> to vector<1x32xf32>
    %43 = vector.extract_strided_slice %29 {offsets = [0, 96], sizes = [1, 32], strides = [1, 1]} : vector<1x128xf32> to vector<1x32xf32>
    %44 = arith.mulf %35, %43 : vector<1x32xf32>
    %45 = arith.addf %42, %44 : vector<1x32xf32>
    %46 = math.tanh %45 : vector<1x32xf32>
    %cst_17 = arith.constant 1.000000e+00 : f32
    %47 = vector.broadcast %cst_17 : f32 to vector<1x32xf32>
    %48 = arith.subf %47, %41 : vector<1x32xf32>
    %49 = arith.mulf %48, %46 : vector<1x32xf32>
    %50 = arith.mulf %41, %0 : vector<1x32xf32>
    %51 = arith.addf %49, %50 : vector<1x32xf32>
    %c1_18 = arith.constant 1 : index
    %c0_19 = arith.constant 0 : index
    %52 = vector.load %arg1[%c1_18, %c0_19] : memref<8x128xf32, #tpu.memory_space<vmem>>, vector<1x32xf32>
    %53 = tpu.concatenate %52, %51 in 1 : vector<1x32xf32>, vector<1x32xf32> -> vector<1x64xf32>
    %c0_20 = arith.constant 0 : index
    %c0_21 = arith.constant 0 : index
    %54 = vector.load %arg2[%c0_20, %c0_21] : memref<200x128xf32, #tpu.memory_space<vmem>>, vector<64x128xf32>
    %cst_22 = arith.constant dense<0.000000e+00> : vector<1x128xf32>
    %55 = tpu.matmul %53, %54, %cst_22 {dimension_numbers = #tpu.dot_dimension_numbers<[1], [0], [0], [1], [0, 0, 1, 1], [], []>} : vector<1x64xf32>, vector<64x128xf32>, vector<1x128xf32> -> vector<1x128xf32>
    %c0_23 = arith.constant 0 : index
    %c0_24 = arith.constant 0 : index
    %56 = vector.load %arg3[%c0_23, %c0_24] : memref<8x128xf32, #tpu.memory_space<vmem>>, vector<1x128xf32>
    %57 = arith.addf %55, %56 : vector<1x128xf32>
    %58 = vector.extract_strided_slice %57 {offsets = [0, 0], sizes = [1, 8], strides = [1, 1]} : vector<1x128xf32> to vector<1x8xf32>
    %cst_25 = arith.constant dense<0xFF800000> : vector<1xf32>
    %59 = vector.multi_reduction <maximumf>, %58, %cst_25 [1] : vector<1x8xf32> to vector<1xf32>
    %60 = vector.shape_cast %59 : vector<1xf32> to vector<1x1xf32>
    %61 = vector.broadcast %60 : vector<1x1xf32> to vector<1x8xf32>
    %62 = arith.subf %58, %61 : vector<1x8xf32>
    %63 = math.exp %62 : vector<1x8xf32>
    %cst_26 = arith.constant dense<0.000000e+00> : vector<1xf32>
    %64 = vector.multi_reduction <add>, %63, %cst_26 [1] : vector<1x8xf32> to vector<1xf32>
    %65 = vector.shape_cast %64 : vector<1xf32> to vector<1x1xf32>
    %66 = vector.broadcast %65 : vector<1x1xf32> to vector<1x8xf32>
    %67 = arith.divf %63, %66 : vector<1x8xf32>
    %68 = tpu.concatenate %52, %67 in 1 : vector<1x32xf32>, vector<1x8xf32> -> vector<1x40xf32>
    %c64_27 = arith.constant 64 : index
    %c0_28 = arith.constant 0 : index
    %69 = vector.load %arg2[%c64_27, %c0_28] : memref<200x128xf32, #tpu.memory_space<vmem>>, vector<40x128xf32>
    %cst_29 = arith.constant dense<0.000000e+00> : vector<1x128xf32>
    %70 = tpu.matmul %68, %69, %cst_29 {dimension_numbers = #tpu.dot_dimension_numbers<[1], [0], [0], [1], [0, 0, 1, 1], [], []>} : vector<1x40xf32>, vector<40x128xf32>, vector<1x128xf32> -> vector<1x128xf32>
    %c1_30 = arith.constant 1 : index
    %c0_31 = arith.constant 0 : index
    %71 = vector.load %arg3[%c1_30, %c0_31] : memref<8x128xf32, #tpu.memory_space<vmem>>, vector<1x128xf32>
    %72 = arith.addf %70, %71 : vector<1x128xf32>
    %73 = vector.extract_strided_slice %72 {offsets = [0, 0], sizes = [1, 32], strides = [1, 1]} : vector<1x128xf32> to vector<1x32xf32>
    %cst_32 = arith.constant 0.000000e+00 : f32
    %74 = vector.broadcast %cst_32 : f32 to vector<1x32xf32>
    %75 = arith.maximumf %73, %74 : vector<1x32xf32>
    %76 = tpu.concatenate %75, %51 in 1 : vector<1x32xf32>, vector<1x32xf32> -> vector<1x64xf32>
    %c104_33 = arith.constant 104 : index
    %c0_34 = arith.constant 0 : index
    %77 = vector.load %arg2[%c104_33, %c0_34] : memref<200x128xf32, #tpu.memory_space<vmem>>, vector<64x128xf32>
    %cst_35 = arith.constant dense<0.000000e+00> : vector<1x128xf32>
    %78 = tpu.matmul %76, %77, %cst_35 {dimension_numbers = #tpu.dot_dimension_numbers<[1], [0], [0], [1], [0, 0, 1, 1], [], []>} : vector<1x64xf32>, vector<64x128xf32>, vector<1x128xf32> -> vector<1x128xf32>
    %c2_36 = arith.constant 2 : index
    %c0_37 = arith.constant 0 : index
    %79 = vector.load %arg3[%c2_36, %c0_37] : memref<8x128xf32, #tpu.memory_space<vmem>>, vector<1x128xf32>
    %80 = arith.addf %78, %79 : vector<1x128xf32>
    %81 = vector.extract_strided_slice %80 {offsets = [0, 0], sizes = [1, 32], strides = [1, 1]} : vector<1x128xf32> to vector<1x32xf32>
    %82 = arith.negf %81 : vector<1x32xf32>
    %83 = math.exp %82 : vector<1x32xf32>
    %cst_38 = arith.constant 1.000000e+00 : f32
    %84 = vector.broadcast %cst_38 : f32 to vector<1x32xf32>
    %85 = arith.addf %84, %83 : vector<1x32xf32>
    %86 = arith.divf %84, %85 : vector<1x32xf32>
    %87 = vector.extract_strided_slice %80 {offsets = [0, 32], sizes = [1, 32], strides = [1, 1]} : vector<1x128xf32> to vector<1x32xf32>
    %88 = arith.negf %87 : vector<1x32xf32>
    %89 = math.exp %88 : vector<1x32xf32>
    %cst_39 = arith.constant 1.000000e+00 : f32
    %90 = vector.broadcast %cst_39 : f32 to vector<1x32xf32>
    %91 = arith.addf %90, %89 : vector<1x32xf32>
    %92 = arith.divf %90, %91 : vector<1x32xf32>
    %93 = vector.extract_strided_slice %80 {offsets = [0, 64], sizes = [1, 32], strides = [1, 1]} : vector<1x128xf32> to vector<1x32xf32>
    %94 = vector.extract_strided_slice %80 {offsets = [0, 96], sizes = [1, 32], strides = [1, 1]} : vector<1x128xf32> to vector<1x32xf32>
    %95 = arith.mulf %86, %94 : vector<1x32xf32>
    %96 = arith.addf %93, %95 : vector<1x32xf32>
    %97 = math.tanh %96 : vector<1x32xf32>
    %cst_40 = arith.constant 1.000000e+00 : f32
    %98 = vector.broadcast %cst_40 : f32 to vector<1x32xf32>
    %99 = arith.subf %98, %92 : vector<1x32xf32>
    %100 = arith.mulf %99, %97 : vector<1x32xf32>
    %101 = arith.mulf %92, %51 : vector<1x32xf32>
    %102 = arith.addf %100, %101 : vector<1x32xf32>
    %c2_41 = arith.constant 2 : index
    %c0_42 = arith.constant 0 : index
    %103 = vector.load %arg1[%c2_41, %c0_42] : memref<8x128xf32, #tpu.memory_space<vmem>>, vector<1x32xf32>
    %104 = tpu.concatenate %103, %102 in 1 : vector<1x32xf32>, vector<1x32xf32> -> vector<1x64xf32>
    %c0_43 = arith.constant 0 : index
    %c0_44 = arith.constant 0 : index
    %105 = vector.load %arg2[%c0_43, %c0_44] : memref<200x128xf32, #tpu.memory_space<vmem>>, vector<64x128xf32>
    %cst_45 = arith.constant dense<0.000000e+00> : vector<1x128xf32>
    %106 = tpu.matmul %104, %105, %cst_45 {dimension_numbers = #tpu.dot_dimension_numbers<[1], [0], [0], [1], [0, 0, 1, 1], [], []>} : vector<1x64xf32>, vector<64x128xf32>, vector<1x128xf32> -> vector<1x128xf32>
    %c0_46 = arith.constant 0 : index
    %c0_47 = arith.constant 0 : index
    %107 = vector.load %arg3[%c0_46, %c0_47] : memref<8x128xf32, #tpu.memory_space<vmem>>, vector<1x128xf32>
    %108 = arith.addf %106, %107 : vector<1x128xf32>
    %109 = vector.extract_strided_slice %108 {offsets = [0, 0], sizes = [1, 8], strides = [1, 1]} : vector<1x128xf32> to vector<1x8xf32>
    %cst_48 = arith.constant dense<0xFF800000> : vector<1xf32>
    %110 = vector.multi_reduction <maximumf>, %109, %cst_48 [1] : vector<1x8xf32> to vector<1xf32>
    %111 = vector.shape_cast %110 : vector<1xf32> to vector<1x1xf32>
    %112 = vector.broadcast %111 : vector<1x1xf32> to vector<1x8xf32>
    %113 = arith.subf %109, %112 : vector<1x8xf32>
    %114 = math.exp %113 : vector<1x8xf32>
    %cst_49 = arith.constant dense<0.000000e+00> : vector<1xf32>
    %115 = vector.multi_reduction <add>, %114, %cst_49 [1] : vector<1x8xf32> to vector<1xf32>
    %116 = vector.shape_cast %115 : vector<1xf32> to vector<1x1xf32>
    %117 = vector.broadcast %116 : vector<1x1xf32> to vector<1x8xf32>
    %118 = arith.divf %114, %117 : vector<1x8xf32>
    %119 = tpu.concatenate %103, %118 in 1 : vector<1x32xf32>, vector<1x8xf32> -> vector<1x40xf32>
    %c64_50 = arith.constant 64 : index
    %c0_51 = arith.constant 0 : index
    %120 = vector.load %arg2[%c64_50, %c0_51] : memref<200x128xf32, #tpu.memory_space<vmem>>, vector<40x128xf32>
    %cst_52 = arith.constant dense<0.000000e+00> : vector<1x128xf32>
    %121 = tpu.matmul %119, %120, %cst_52 {dimension_numbers = #tpu.dot_dimension_numbers<[1], [0], [0], [1], [0, 0, 1, 1], [], []>} : vector<1x40xf32>, vector<40x128xf32>, vector<1x128xf32> -> vector<1x128xf32>
    %c1_53 = arith.constant 1 : index
    %c0_54 = arith.constant 0 : index
    %122 = vector.load %arg3[%c1_53, %c0_54] : memref<8x128xf32, #tpu.memory_space<vmem>>, vector<1x128xf32>
    %123 = arith.addf %121, %122 : vector<1x128xf32>
    %124 = vector.extract_strided_slice %123 {offsets = [0, 0], sizes = [1, 32], strides = [1, 1]} : vector<1x128xf32> to vector<1x32xf32>
    %cst_55 = arith.constant 0.000000e+00 : f32
    %125 = vector.broadcast %cst_55 : f32 to vector<1x32xf32>
    %126 = arith.maximumf %124, %125 : vector<1x32xf32>
    %127 = tpu.concatenate %126, %102 in 1 : vector<1x32xf32>, vector<1x32xf32> -> vector<1x64xf32>
    %c104_56 = arith.constant 104 : index
    %c0_57 = arith.constant 0 : index
    %128 = vector.load %arg2[%c104_56, %c0_57] : memref<200x128xf32, #tpu.memory_space<vmem>>, vector<64x128xf32>
    %cst_58 = arith.constant dense<0.000000e+00> : vector<1x128xf32>
    %129 = tpu.matmul %127, %128, %cst_58 {dimension_numbers = #tpu.dot_dimension_numbers<[1], [0], [0], [1], [0, 0, 1, 1], [], []>} : vector<1x64xf32>, vector<64x128xf32>, vector<1x128xf32> -> vector<1x128xf32>
    %c2_59 = arith.constant 2 : index
    %c0_60 = arith.constant 0 : index
    %130 = vector.load %arg3[%c2_59, %c0_60] : memref<8x128xf32, #tpu.memory_space<vmem>>, vector<1x128xf32>
    %131 = arith.addf %129, %130 : vector<1x128xf32>
    %132 = vector.extract_strided_slice %131 {offsets = [0, 0], sizes = [1, 32], strides = [1, 1]} : vector<1x128xf32> to vector<1x32xf32>
    %133 = arith.negf %132 : vector<1x32xf32>
    %134 = math.exp %133 : vector<1x32xf32>
    %cst_61 = arith.constant 1.000000e+00 : f32
    %135 = vector.broadcast %cst_61 : f32 to vector<1x32xf32>
    %136 = arith.addf %135, %134 : vector<1x32xf32>
    %137 = arith.divf %135, %136 : vector<1x32xf32>
    %138 = vector.extract_strided_slice %131 {offsets = [0, 32], sizes = [1, 32], strides = [1, 1]} : vector<1x128xf32> to vector<1x32xf32>
    %139 = arith.negf %138 : vector<1x32xf32>
    %140 = math.exp %139 : vector<1x32xf32>
    %cst_62 = arith.constant 1.000000e+00 : f32
    %141 = vector.broadcast %cst_62 : f32 to vector<1x32xf32>
    %142 = arith.addf %141, %140 : vector<1x32xf32>
    %143 = arith.divf %141, %142 : vector<1x32xf32>
    %144 = vector.extract_strided_slice %131 {offsets = [0, 64], sizes = [1, 32], strides = [1, 1]} : vector<1x128xf32> to vector<1x32xf32>
    %145 = vector.extract_strided_slice %131 {offsets = [0, 96], sizes = [1, 32], strides = [1, 1]} : vector<1x128xf32> to vector<1x32xf32>
    %146 = arith.mulf %137, %145 : vector<1x32xf32>
    %147 = arith.addf %144, %146 : vector<1x32xf32>
    %148 = math.tanh %147 : vector<1x32xf32>
    %cst_63 = arith.constant 1.000000e+00 : f32
    %149 = vector.broadcast %cst_63 : f32 to vector<1x32xf32>
    %150 = arith.subf %149, %143 : vector<1x32xf32>
    %151 = arith.mulf %150, %148 : vector<1x32xf32>
    %152 = arith.mulf %143, %102 : vector<1x32xf32>
    %153 = arith.addf %151, %152 : vector<1x32xf32>
    %c3 = arith.constant 3 : index
    %c0_64 = arith.constant 0 : index
    %154 = vector.load %arg1[%c3, %c0_64] : memref<8x128xf32, #tpu.memory_space<vmem>>, vector<1x32xf32>
    %155 = tpu.concatenate %154, %153 in 1 : vector<1x32xf32>, vector<1x32xf32> -> vector<1x64xf32>
    %c0_65 = arith.constant 0 : index
    %c0_66 = arith.constant 0 : index
    %156 = vector.load %arg2[%c0_65, %c0_66] : memref<200x128xf32, #tpu.memory_space<vmem>>, vector<64x128xf32>
    %cst_67 = arith.constant dense<0.000000e+00> : vector<1x128xf32>
    %157 = tpu.matmul %155, %156, %cst_67 {dimension_numbers = #tpu.dot_dimension_numbers<[1], [0], [0], [1], [0, 0, 1, 1], [], []>} : vector<1x64xf32>, vector<64x128xf32>, vector<1x128xf32> -> vector<1x128xf32>
    %c0_68 = arith.constant 0 : index
    %c0_69 = arith.constant 0 : index
    %158 = vector.load %arg3[%c0_68, %c0_69] : memref<8x128xf32, #tpu.memory_space<vmem>>, vector<1x128xf32>
    %159 = arith.addf %157, %158 : vector<1x128xf32>
    %160 = vector.extract_strided_slice %159 {offsets = [0, 0], sizes = [1, 8], strides = [1, 1]} : vector<1x128xf32> to vector<1x8xf32>
    %cst_70 = arith.constant dense<0xFF800000> : vector<1xf32>
    %161 = vector.multi_reduction <maximumf>, %160, %cst_70 [1] : vector<1x8xf32> to vector<1xf32>
    %162 = vector.shape_cast %161 : vector<1xf32> to vector<1x1xf32>
    %163 = vector.broadcast %162 : vector<1x1xf32> to vector<1x8xf32>
    %164 = arith.subf %160, %163 : vector<1x8xf32>
    %165 = math.exp %164 : vector<1x8xf32>
    %cst_71 = arith.constant dense<0.000000e+00> : vector<1xf32>
    %166 = vector.multi_reduction <add>, %165, %cst_71 [1] : vector<1x8xf32> to vector<1xf32>
    %167 = vector.shape_cast %166 : vector<1xf32> to vector<1x1xf32>
    %168 = vector.broadcast %167 : vector<1x1xf32> to vector<1x8xf32>
    %169 = arith.divf %165, %168 : vector<1x8xf32>
    %170 = tpu.concatenate %154, %169 in 1 : vector<1x32xf32>, vector<1x8xf32> -> vector<1x40xf32>
    %c64_72 = arith.constant 64 : index
    %c0_73 = arith.constant 0 : index
    %171 = vector.load %arg2[%c64_72, %c0_73] : memref<200x128xf32, #tpu.memory_space<vmem>>, vector<40x128xf32>
    %cst_74 = arith.constant dense<0.000000e+00> : vector<1x128xf32>
    %172 = tpu.matmul %170, %171, %cst_74 {dimension_numbers = #tpu.dot_dimension_numbers<[1], [0], [0], [1], [0, 0, 1, 1], [], []>} : vector<1x40xf32>, vector<40x128xf32>, vector<1x128xf32> -> vector<1x128xf32>
    %c1_75 = arith.constant 1 : index
    %c0_76 = arith.constant 0 : index
    %173 = vector.load %arg3[%c1_75, %c0_76] : memref<8x128xf32, #tpu.memory_space<vmem>>, vector<1x128xf32>
    %174 = arith.addf %172, %173 : vector<1x128xf32>
    %175 = vector.extract_strided_slice %174 {offsets = [0, 0], sizes = [1, 32], strides = [1, 1]} : vector<1x128xf32> to vector<1x32xf32>
    %cst_77 = arith.constant 0.000000e+00 : f32
    %176 = vector.broadcast %cst_77 : f32 to vector<1x32xf32>
    %177 = arith.maximumf %175, %176 : vector<1x32xf32>
    %178 = tpu.concatenate %177, %153 in 1 : vector<1x32xf32>, vector<1x32xf32> -> vector<1x64xf32>
    %c104_78 = arith.constant 104 : index
    %c0_79 = arith.constant 0 : index
    %179 = vector.load %arg2[%c104_78, %c0_79] : memref<200x128xf32, #tpu.memory_space<vmem>>, vector<64x128xf32>
    %cst_80 = arith.constant dense<0.000000e+00> : vector<1x128xf32>
    %180 = tpu.matmul %178, %179, %cst_80 {dimension_numbers = #tpu.dot_dimension_numbers<[1], [0], [0], [1], [0, 0, 1, 1], [], []>} : vector<1x64xf32>, vector<64x128xf32>, vector<1x128xf32> -> vector<1x128xf32>
    %c2_81 = arith.constant 2 : index
    %c0_82 = arith.constant 0 : index
    %181 = vector.load %arg3[%c2_81, %c0_82] : memref<8x128xf32, #tpu.memory_space<vmem>>, vector<1x128xf32>
    %182 = arith.addf %180, %181 : vector<1x128xf32>
    %183 = vector.extract_strided_slice %182 {offsets = [0, 0], sizes = [1, 32], strides = [1, 1]} : vector<1x128xf32> to vector<1x32xf32>
    %184 = arith.negf %183 : vector<1x32xf32>
    %185 = math.exp %184 : vector<1x32xf32>
    %cst_83 = arith.constant 1.000000e+00 : f32
    %186 = vector.broadcast %cst_83 : f32 to vector<1x32xf32>
    %187 = arith.addf %186, %185 : vector<1x32xf32>
    %188 = arith.divf %186, %187 : vector<1x32xf32>
    %189 = vector.extract_strided_slice %182 {offsets = [0, 32], sizes = [1, 32], strides = [1, 1]} : vector<1x128xf32> to vector<1x32xf32>
    %190 = arith.negf %189 : vector<1x32xf32>
    %191 = math.exp %190 : vector<1x32xf32>
    %cst_84 = arith.constant 1.000000e+00 : f32
    %192 = vector.broadcast %cst_84 : f32 to vector<1x32xf32>
    %193 = arith.addf %192, %191 : vector<1x32xf32>
    %194 = arith.divf %192, %193 : vector<1x32xf32>
    %195 = vector.extract_strided_slice %182 {offsets = [0, 64], sizes = [1, 32], strides = [1, 1]} : vector<1x128xf32> to vector<1x32xf32>
    %196 = vector.extract_strided_slice %182 {offsets = [0, 96], sizes = [1, 32], strides = [1, 1]} : vector<1x128xf32> to vector<1x32xf32>
    %197 = arith.mulf %188, %196 : vector<1x32xf32>
    %198 = arith.addf %195, %197 : vector<1x32xf32>
    %199 = math.tanh %198 : vector<1x32xf32>
    %cst_85 = arith.constant 1.000000e+00 : f32
    %200 = vector.broadcast %cst_85 : f32 to vector<1x32xf32>
    %201 = arith.subf %200, %194 : vector<1x32xf32>
    %202 = arith.mulf %201, %199 : vector<1x32xf32>
    %203 = arith.mulf %194, %153 : vector<1x32xf32>
    %204 = arith.addf %202, %203 : vector<1x32xf32>
    %205 = tpu.concatenate %51, %102, %153, %204 in 0 : vector<1x32xf32>, vector<1x32xf32>, vector<1x32xf32>, vector<1x32xf32> -> vector<4x32xf32>
    %206 = tpu.concatenate %16, %67, %118, %169 in 0 : vector<1x8xf32>, vector<1x8xf32>, vector<1x8xf32>, vector<1x8xf32> -> vector<4x8xf32>
    %c168 = arith.constant 168 : index
    %c0_86 = arith.constant 0 : index
    %207 = vector.load %arg2[%c168, %c0_86] : memref<200x128xf32, #tpu.memory_space<vmem>>, vector<32x128xf32>
    %cst_87 = arith.constant dense<0.000000e+00> : vector<4x128xf32>
    %208 = tpu.matmul %205, %207, %cst_87 {dimension_numbers = #tpu.dot_dimension_numbers<[1], [0], [0], [1], [0, 0, 1, 1], [], []>} : vector<4x32xf32>, vector<32x128xf32>, vector<4x128xf32> -> vector<4x128xf32>
    %c3_88 = arith.constant 3 : index
    %c0_89 = arith.constant 0 : index
    %209 = vector.load %arg3[%c3_88, %c0_89] : memref<8x128xf32, #tpu.memory_space<vmem>>, vector<1x128xf32>
    %210 = vector.broadcast %209 : vector<1x128xf32> to vector<4x128xf32>
    %211 = arith.addf %208, %210 : vector<4x128xf32>
    %212 = vector.extract_strided_slice %211 {offsets = [0, 0], sizes = [4, 64], strides = [1, 1]} : vector<4x128xf32> to vector<4x64xf32>
    %cst_90 = arith.constant dense<0xFF800000> : vector<4xf32>
    %213 = vector.multi_reduction <maximumf>, %212, %cst_90 [1] : vector<4x64xf32> to vector<4xf32>
    %214 = vector.shape_cast %213 : vector<4xf32> to vector<4x1xf32>
    %215 = vector.broadcast %214 : vector<4x1xf32> to vector<4x64xf32>
    %216 = arith.subf %212, %215 : vector<4x64xf32>
    %217 = math.exp %216 : vector<4x64xf32>
    %cst_91 = arith.constant dense<0.000000e+00> : vector<4xf32>
    %218 = vector.multi_reduction <add>, %217, %cst_91 [1] : vector<4x64xf32> to vector<4xf32>
    %219 = vector.shape_cast %218 : vector<4xf32> to vector<4x1xf32>
    %220 = math.log %219 : vector<4x1xf32>
    %221 = vector.broadcast %220 : vector<4x1xf32> to vector<4x64xf32>
    %222 = arith.subf %216, %221 : vector<4x64xf32>
    %cst_92 = arith.constant 0.000000e+00 : f32
    %223 = vector.broadcast %cst_92 : f32 to vector<4x24xf32>
    %224 = tpu.concatenate %222, %205, %206, %223 in 1 : vector<4x64xf32>, vector<4x32xf32>, vector<4x8xf32>, vector<4x24xf32> -> vector<4x128xf32>
    %cst_93 = arith.constant 0.000000e+00 : f32
    %225 = vector.broadcast %cst_93 : f32 to vector<4x128xf32>
    %226 = tpu.concatenate %224, %225 in 0 : vector<4x128xf32>, vector<4x128xf32> -> vector<8x128xf32>
    %c0_94 = arith.constant 0 : index
    %c0_95 = arith.constant 0 : index
    %227 = vector.load %arg4[%c0_94, %c0_95] : memref<8x128xf32, #tpu.memory_space<vmem>>, vector<8x128xf32>
    tpu.vector_store %arg4[%c0_94, %c0_95], %226 {strides = array<i32>} : memref<8x128xf32, #tpu.memory_space<vmem>>, vector<8x128xf32>,
    return
  }
  func.func @transform_0(%arg0: i32) -> (i32, i32) {
    %c0_i32 = arith.constant 0 : i32
    %c0_i32_0 = arith.constant 0 : i32
    %c0_i32_1 = arith.constant 0 : i32
    return %c0_i32, %c0_i32_0 : i32, i32
  }
  func.func @transform_1(%arg0: i32) -> (i32, i32) {
    %c0_i32 = arith.constant 0 : i32
    %c0_i32_0 = arith.constant 0 : i32
    %c0_i32_1 = arith.constant 0 : i32
    return %c0_i32, %c0_i32_0 : i32, i32
  }
  func.func @transform_2(%arg0: i32) -> (i32, i32) {
    %c0_i32 = arith.constant 0 : i32
    %c0_i32_0 = arith.constant 0 : i32
    %c0_i32_1 = arith.constant 0 : i32
    return %c0_i32, %c0_i32_0 : i32, i32
  }
  func.func @transform_3(%arg0: i32) -> (i32, i32) {
    %c0_i32 = arith.constant 0 : i32
    %c0_i32_0 = arith.constant 0 : i32
    %c0_i32_1 = arith.constant 0 : i32
    return %c0_i32, %c0_i32_0 : i32, i32
  }
}

</mosaic_0001>

<bundles_post_ra>
// kernel: attn_decoder_forward.1
= control target key start
LH: loop header
LB: loop body
LE: loop exit
PB: predicated region body
PF: predicated region fallthrough
CT: control target
= control target key end

     0   :  { %v1753_v1 = vmov 0.0|0.0   ;;  %vm1754_vm0 = vmmov 0   ;;  %v1755_v4 = vmov 0.0   ;;  %s1756_s18 = smov 32   ;;  %vm20_vm1 = vcmask 261120   ;;  %s1757_s12 = smov 64   ;;  %s2137_s2 = inlined_call_operand.vmem [shape: f32[8,128], index: 2, kind: input, shape index: {}]   ;;  %s2138_s1 = inlined_call_operand.vmem [shape: f32[200,128], index: 1, kind: input, shape index: {}]   ;;  %s2139_s0 = inlined_call_operand.vmem [shape: f32[8,128], index: 0, kind: input, shape index: {}]   ;;  %s2140_s3 = inlined_call_operand.vmem [shape: f32[8,128], index: 3, kind: output, shape index: {}]  }
   0x1   :  { %v14_v0 = vld [vmem:[%s2137_s2 + $0x4] sm:$0x1]  ;;  %1577 = vmatprep.subr.bf16.mxu0 %v1753_v1  ;;  %v23_v3 = vld [vmem:[%s2138_s1 + $0x8] sm:$0xff]  ;;  %1378 = vmatprep.mubr.msk.f32.mxu0 %vm1754_vm0, %v1755_v4  ;;  %v24_v6 = vld [vmem:[%s2138_s1 + $0x10] sm:$0xff]  ;;  %vm31_vm2 = vcmask 523264   ;;  %vm105_vm3 = vcmask 57344  }
   0x2   :  { %v22_v2 = vld [vmem:[%s2138_s1] sm:$0xff]  ;;  %17 = vrot.lane.b32.xlu0 %v14_v0, %s1756_s18  ;;  %v25_v7 = vld [vmem:[%s2138_s1 + $0x18] sm:$0xff]  ;;  %1589 = vmatprep.subr.bf16.mxu1 %v1753_v1  ;;  %v27_v10 = vld [vmem:[%s2138_s1 + $0x28] sm:$0xff]  ;;  %vm128_vm4 = vcmask 326656   ;;  %s1758_s13 = smov 96   ;;  %vm1112_vm5 = vcmask 1040384  }
   0x3   :  { %v1792_v5 = vpack.c.bf16 %v23_v3, %v22_v2  ;;  %1391 = vmatprep.mubr.msk.f32.mxu1 %vm1754_vm0, %v1755_v4  ;;  %v1804_v8 = vpack.c.bf16 %v25_v7, %v24_v6  ;;  %v26_v9 = vld [vmem:[%s2138_s1 + $0x20] sm:$0xff]  ;;  %v28_v12 = vld [vmem:[%s2138_s1 + $0x30] sm:$0xff]  ;;  %v29_v13 = vld [vmem:[%s2138_s1 + $0x38] sm:$0xff]  ;;  %vm1114_vm6 = vcmask 1041408   ;;  %vm1116_vm7 = vcmask 1042432  }
   0x4   :  { %v1814_v11 = vpack.c.bf16 %v27_v10, %v26_v9  ;;  %v1824_v14 = vpack.c.bf16 %v29_v13, %v28_v12  ;;  %v15_v15 = vld [vmem:[%s2139_s0] sm:$0x1]  ;;  %v123_v29 = vld [vmem:[%s2138_s1 + $0x48] sm:$0xff]  ;;  %v124_v30 = vld [vmem:[%s2138_s1 + $0x50] sm:$0xff]  ;;  %vm1211_vm8 = vcmask 519168   ;;  %vm1232_vm9 = vcmask 785408  }
   0x5   :  { %1579 = vmatpush3.bf16.msra.mxu0 %v1792_v5  ;;  %v1850_v18 = vld [vmem:[%s2137_s2] sm:$0x1]  ;;  %v125_v32 = vld [vmem:[%s2138_s1 + $0x58] sm:$0xff]  ;;  %v204_v38 = vld [vmem:[%s2138_s1 + $0x68] sm:$0xff]  ;;  %vm1234_vm10 = vcmask 850944   ;;  %vm1236_vm11 = vcmask 1043456  }
   0x6   :  { %1580 = vmatprep.subr.bf16.mxu0 %v1753_v1  ;;  %v122_v28 = vld [vmem:[%s2138_s1 + $0x40] sm:$0xff]  ;;  %v1870_v33 = vpack.c.bf16 %v125_v32, %v124_v30  ;;  %v205_v39 = vld [vmem:[%s2138_s1 + $0x70] sm:$0xff]  ;;  %v206_v42 = vld [vmem:[%s2138_s1 + $0x78] sm:$0xff] }
   0x7   :  { %v1864_v31 = vpack.c.bf16 %v123_v29, %v122_v28  ;;  %v1878_v35 = vld [vmem:[%s2138_s1 + $0x60] sm:$0xff]  ;;  %v1892_v40 = vpack.c.bf16 %v205_v39, %v204_v38  ;;  %v208_v46 = vld [vmem:[%s2138_s1 + $0x88] sm:$0xff]  ;;  %v209_v47 = vld [vmem:[%s2138_s1 + $0x90] sm:$0xff] }
   0x8   :  { %v207_v43 = vld [vmem:[%s2138_s1 + $0x80] sm:$0xff]  ;;  %v1915_v48 = vpack.c.bf16 %v209_v47, %v208_v46  ;;  %v210_v49 = vld [vmem:[%s2138_s1 + $0x98] sm:$0xff] }
   0x9   :  { %1582 = vmatpush3.bf16.msra.mxu0 %v1804_v8  ;;  %1591 = vmatpush3.bf16.msra.mxu1 %v1864_v31  ;;  %v1903_v45 = vpack.c.bf16 %v207_v43, %v206_v42  ;;  %v211_v50 = vld [vmem:[%s2138_s1 + $0xa0] sm:$0xff] }
   0xa   :  { %1583 = vmatprep.subr.bf16.mxu0 %v1753_v1  ;;  %1592 = vmatprep.subr.bf16.mxu1 %v1753_v1  ;;  %v1926_v51 = vpack.c.bf16 %v211_v50, %v210_v49  ;;  %v1933_v52 = vld [vmem:[%s2137_s2 + $0x1] sm:$0x1]  ;;  %v1950_v58 = vld [vmem:[%s2137_s2 + $0x2] sm:$0x1] }
   0xd   :  { %1585 = vmatpush3.bf16.msra.mxu0 %v1814_v11  ;;  %1594 = vmatpush3.bf16.msra.mxu1 %v1870_v33 }
   0xe   :  { %1586 = vmatprep.subr.bf16.mxu0 %v1753_v1  ;;  %1389 = vmatprep.subr.mxu1 %v1755_v4 }
  0x11   :  { %1588 = vmatpush3.bf16.msra.mxu0 %v1824_v14  ;;  %1390 = vmatpush3.msra.mxu1 %v1878_v35 }
  0x12   :  { %1607 = vmatprep.subr.bf16.mxu0 %v1753_v1  ;;  %1595 = vmatprep.subr.bf16.mxu1 %v1753_v1 }
  0x74   :  { %v1832_v16 = vpop.permute.xlu0 %17 }
  0x75   :  { %v21_v17 = vsel %vm20_vm1, %v15_v15, %v1832_v16 }
  0x76   :  { %1379 = vmatmul.mubr.msk.f32.vlgmr.msra.gmra.mrb[0].mxu0 %vm31_vm2, %v21_v17 }
  0x77   :  { %1609 = vmatpush3.bf16.msra.mxu0 %v1792_v5  ;;  %1429 = vmatprep.mubr.msk.f32.mxu0 %vm1754_vm0, %v1755_v4 }
  0x78   :  { %1610 = vmatprep.subr.bf16.mxu0 %v1753_v1 }
  0x7b   :  { %1612 = vmatpush3.bf16.msra.mxu0 %v1804_v8 }
  0x7c   :  { %1613 = vmatprep.subr.bf16.mxu0 %v1753_v1 }
  0x7f   :  { %1615 = vmatpush3.bf16.msra.mxu0 %v1814_v11 }
  0x80   :  { %1616 = vmatprep.subr.bf16.mxu0 %v1753_v1 }
  0x83   :  { %1618 = vmatpush3.bf16.msra.mxu0 %v1824_v14 }
  0x84   :  { %1625 = vmatprep.subr.bf16.mxu0 %v1753_v1 }
 0x149   :  { %v101_v19 = vpop.f32.mrb[0].mxu0 }
 0x14a   :  { %v102_v20 = vadd.f32 %v101_v19, %v1850_v18  ;;  %v1380_v21 = vpop.f32.mrb[1].mxu0  ;;  %v311_v19 = vld [vmem:[%s2139_s0 + $0x1] sm:$0x1] }
 0x14c   :  { %v106_v22 = vsel %vm105_vm3, %v102_v20, -inf }
 0x14d   :  { %107 = vmax.xlane.f32.xlu0 %v106_v22 }
 0x1da   :  { %v108_v23 = vpop.xlane.xlu0 %107 }
 0x1db   :  { %v109_v24 = vsub.f32 %v102_v20, %v108_v23 }
 0x1dd   :  { %v110_v25 = vmul.f32 1.442695, %v109_v24 }
 0x1df   :  { %1709 = vpow2.f32 %v110_v25 }
 0x1e9   :  { %v1710_v26 = vpop.eup %1709 }
 0x1ea   :  { %v112_v27 = vsel %vm105_vm3, %v1710_v26, 0.0 }
 0x1eb   :  { %113 = vadd.xlane.f32.xlu1 %v112_v27 }
 0x278   :  { %v114_v34 = vpop.xlane.xlu1 %113 }
 0x279   :  { %1711 = vrcp.f32 %v114_v34 }
 0x283   :  { %v1712_v36 = vpop.eup %1711 }
 0x284   :  { %v1882_v37 = vmul.f32 %v1712_v36, %v1710_v26 }
 0x286   :  { %118 = vrot.lane.b32.xlu1 %v1882_v37, %s1756_s18 }
 0x2f8   :  { %v119_v41 = vpop.permute.xlu1 %118 }
 0x2f9   :  { %v121_v44 = vsel %vm20_vm1, %v15_v15, %v119_v41 }
 0x2fa   :  { %1392 = vmatmul.mubr.msk.f32.vlgmr.msra.gmra.mrb[0].mxu1 %vm128_vm4, %v121_v44 }
 0x2fb   :  { %1597 = vmatpush3.bf16.msra.mxu1 %v1892_v40  ;;  %1410 = vmatprep.mubr.msk.f32.mxu1 %vm1754_vm0, %v1755_v4 }
 0x2fc   :  { %1598 = vmatprep.subr.bf16.mxu1 %v1753_v1 }
 0x2ff   :  { %1600 = vmatpush3.bf16.msra.mxu1 %v1903_v45 }
 0x300   :  { %1601 = vmatprep.subr.bf16.mxu1 %v1753_v1 }
 0x303   :  { %1603 = vmatpush3.bf16.msra.mxu1 %v1915_v48 }
 0x304   :  { %1604 = vmatprep.subr.bf16.mxu1 %v1753_v1 }
 0x307   :  { %1606 = vmatpush3.bf16.msra.mxu1 %v1926_v51 }
 0x308   :  { %1619 = vmatprep.subr.bf16.mxu1 %v1753_v1 }
 0x3cd   :  { %v198_v53 = vpop.f32.mrb[0].mxu1 }
 0x3ce   :  { %v199_v54 = vadd.f32 %v198_v53, %v1933_v52  ;;  %v1393_v55 = vpop.f32.mrb[1].mxu1 }
 0x3d0   :  { %v202_v56 = vmax.f32 %v199_v54, 0.0 }
 0x3d2   :  { %v203_v57 = vsel %vm20_vm1, %v202_v56, %v1832_v16 }
 0x3d3   :  { %1411 = vmatmul.mubr.msk.f32.vlgmr.msra.gmra.mrb[2].mxu1 %vm31_vm2, %v203_v57 }
 0x3d4   :  { %1621 = vmatpush3.bf16.msra.mxu1 %v1864_v31  ;;  %1442 = vmatprep.mubr.msk.f32.mxu1 %vm1754_vm0, %v1755_v4 }
 0x3d5   :  { %1622 = vmatprep.subr.bf16.mxu1 %v1753_v1 }
 0x3d8   :  { %1624 = vmatpush3.bf16.msra.mxu1 %v1870_v33 }
 0x3d9   :  { %1440 = vmatprep.subr.mxu1 %v1755_v4 }
 0x3dc   :  { %1441 = vmatpush3.msra.mxu1 %v1878_v35 }
 0x3dd   :  { %1637 = vmatprep.subr.bf16.mxu1 %v1753_v1 }
 0x4a6   :  { %v282_v59 = vpop.f32.mrb[2].mxu1 }
 0x4a7   :  { %v283_v60 = vadd.f32 %v282_v59, %v1950_v58  ;;  %v1412_v61 = vpop.f32.mrb[3].mxu1 }
 0x4a9   :  { %293 = vrot.lane.b32.xlu1 %v283_v60, %s1756_s18  ;;  %v1246_v62 = vmul.f32 -1.442695, %v283_v60 }
 0x4ab   :  { %1713 = vpow2.f32 %v1246_v62 }
 0x4b5   :  { %v1714_v63 = vpop.eup %1713 }
 0x4b6   :  { %v289_v0 = vadd.f32 1.0, %v1714_v63 }
 0x4b8   :  { %1715 = vrcp.f32 %v289_v0 }
 0x4c2   :  { %v1716_v2 = vpop.eup %1715 }
 0x4c3   :  { %v303_v12 = vsub.f32 1.0, %v1716_v2  ;;  %v309_v15 = vmul.f32 %v1716_v2, %v1832_v16 }
 0x51b   :  { %v294_v3 = vpop.permute.xlu1 %293 }
 0x51c   :  { %v296_v6 = vmul.f32 %v1716_v2, %v294_v3  ;;  %v575_v3 = vld [vmem:[%s2139_s0 + $0x2] sm:$0x1] }
 0x51e   :  { %298 = vrot.lane.b32.xlu1 %v296_v6, %s1757_s12 }
 0x590   :  { %v299_v7 = vpop.permute.xlu1 %298 }
 0x591   :  { %v301_v9 = vadd.f32 %v299_v7, %v283_v60 }
 0x593   :  { %1717 = vtanh.f32 %v301_v9 }
 0x59d   :  { %v1718_v10 = vpop.eup %1717 }
 0x59e   :  { %305 = vrot.lane.b32.xlu1 %v1718_v10, %s1758_s13 }
 0x610   :  { %v306_v13 = vpop.permute.xlu1 %305 }
 0x611   :  { %v308_v17 = vmul.f32 %v306_v13, %v303_v12 }
 0x613   :  { %v1960_v20 = vadd.f32 %v309_v15, %v308_v17 }
 0x615   :  { %v312_v21 = vsel %vm20_vm1, %v311_v19, %v1960_v20 }
 0x616   :  { %1430 = vmatmul.mubr.msk.f32.vlgmr.msra.gmra.mrb[2].mxu0 %vm31_vm2, %v312_v21 }
 0x617   :  { %1627 = vmatpush3.bf16.msra.mxu0 %v1892_v40  ;;  %1461 = vmatprep.mubr.msk.f32.mxu0 %vm1754_vm0, %v1755_v4 }
 0x618   :  { %1628 = vmatprep.subr.bf16.mxu0 %v1753_v1 }
 0x61b   :  { %1630 = vmatpush3.bf16.msra.mxu0 %v1903_v45 }
 0x61c   :  { %1631 = vmatprep.subr.bf16.mxu0 %v1753_v1 }
 0x61f   :  { %1633 = vmatpush3.bf16.msra.mxu0 %v1915_v48 }
 0x620   :  { %1634 = vmatprep.subr.bf16.mxu0 %v1753_v1 }
 0x623   :  { %1636 = vmatpush3.bf16.msra.mxu0 %v1926_v51 }
 0x624   :  { %1649 = vmatprep.subr.bf16.mxu0 %v1753_v1 }
 0x6e9   :  { %v382_v16 = vpop.f32.mrb[2].mxu0 }
 0x6ea   :  { %v383_v22 = vadd.f32 %v382_v16, %v1850_v18  ;;  %v1431_v23 = vpop.f32.mrb[3].mxu0 }
 0x6ec   :  { %v386_v24 = vsel %vm105_vm3, %v383_v22, -inf }
 0x6ed   :  { %387 = vmax.xlane.f32.xlu1 %v386_v24 }
 0x77a   :  { %v388_v25 = vpop.xlane.xlu1 %387 }
 0x77b   :  { %v389_v26 = vsub.f32 %v383_v22, %v388_v25 }
 0x77d   :  { %v390_v27 = vmul.f32 1.442695, %v389_v26 }
 0x77f   :  { %1719 = vpow2.f32 %v390_v27 }
 0x789   :  { %v1720_v28 = vpop.eup %1719 }
 0x78a   :  { %v392_v29 = vsel %vm105_vm3, %v1720_v28, 0.0 }
 0x78b   :  { %393 = vadd.xlane.f32.xlu0 %v392_v29 }
 0x818   :  { %v394_v30 = vpop.xlane.xlu0 %393 }
 0x819   :  { %1721 = vrcp.f32 %v394_v30 }
 0x823   :  { %v1722_v32 = vpop.eup %1721 }
 0x824   :  { %v1978_v34 = vmul.f32 %v1722_v32, %v1720_v28 }
 0x826   :  { %398 = vrot.lane.b32.xlu0 %v1978_v34, %s1756_s18  ;;  %v1118_v24 = vrot.slane %v1978_v34, 7 }
 0x828   :  { %v1124_v27 = vsel %vm1112_vm5, %v1882_v37, %v1118_v24 }
 0x898   :  { %v399_v36 = vpop.permute.xlu0 %398 }
 0x899   :  { %v401_v38 = vsel %vm20_vm1, %v311_v19, %v399_v36 }
 0x89a   :  { %1443 = vmatmul.mubr.msk.f32.vlgmr.msra.gmra.mrb[4].mxu1 %vm128_vm4, %v401_v38 }
 0x89b   :  { %1639 = vmatpush3.bf16.msra.mxu1 %v1792_v5  ;;  %1480 = vmatprep.mubr.msk.f32.mxu1 %vm1754_vm0, %v1755_v4 }
 0x89c   :  { %1640 = vmatprep.subr.bf16.mxu1 %v1753_v1 }
 0x89f   :  { %1642 = vmatpush3.bf16.msra.mxu1 %v1804_v8 }
 0x8a0   :  { %1643 = vmatprep.subr.bf16.mxu1 %v1753_v1 }
 0x8a3   :  { %1645 = vmatpush3.bf16.msra.mxu1 %v1814_v11 }
 0x8a4   :  { %1646 = vmatprep.subr.bf16.mxu1 %v1753_v1 }
 0x8a7   :  { %1648 = vmatpush3.bf16.msra.mxu1 %v1824_v14 }
 0x8a8   :  { %1655 = vmatprep.subr.bf16.mxu1 %v1753_v1 }
 0x96d   :  { %v471_v39 = vpop.f32.mrb[4].mxu1 }
 0x96e   :  { %v472_v41 = vadd.f32 %v471_v39, %v1933_v52  ;;  %v1444_v42 = vpop.f32.mrb[5].mxu1 }
 0x970   :  { %v475_v43 = vmax.f32 %v472_v41, 0.0 }
 0x972   :  { %v476_v44 = vsel %vm20_vm1, %v475_v43, %v1960_v20 }
 0x973   :  { %1462 = vmatmul.mubr.msk.f32.vlgmr.msra.gmra.mrb[4].mxu0 %vm31_vm2, %v476_v44 }
 0x974   :  { %1651 = vmatpush3.bf16.msra.mxu0 %v1864_v31  ;;  %1493 = vmatprep.mubr.msk.f32.mxu0 %vm1754_vm0, %v1755_v4 }
 0x975   :  { %1652 = vmatprep.subr.bf16.mxu0 %v1753_v1 }
 0x978   :  { %1654 = vmatpush3.bf16.msra.mxu0 %v1870_v33 }
 0x979   :  { %1491 = vmatprep.subr.mxu0 %v1755_v4 }
 0x97c   :  { %1492 = vmatpush3.msra.mxu0 %v1878_v35 }
 0x97d   :  { %1667 = vmatprep.subr.bf16.mxu0 %v1753_v1 }
 0xa46   :  { %v546_v46 = vpop.f32.mrb[4].mxu0 }
 0xa47   :  { %v547_v47 = vadd.f32 %v546_v46, %v1950_v58  ;;  %v1463_v49 = vpop.f32.mrb[5].mxu0 }
 0xa49   :  { %557 = vrot.lane.b32.xlu0 %v547_v47, %s1756_s18  ;;  %v1250_v50 = vmul.f32 -1.442695, %v547_v47 }
 0xa4b   :  { %1723 = vpow2.f32 %v1250_v50 }
 0xa55   :  { %v1724_v53 = vpop.eup %1723 }
 0xa56   :  { %v553_v54 = vadd.f32 1.0, %v1724_v53  ;;  %v839_v53 = vld [vmem:[%s2139_s0 + $0x3] sm:$0x1] }
 0xa58   :  { %1725 = vrcp.f32 %v553_v54 }
 0xa62   :  { %v1726_v55 = vpop.eup %1725 }
 0xa63   :  { %v567_v62 = vsub.f32 1.0, %v1726_v55  ;;  %v573_v0 = vmul.f32 %v1726_v55, %v1960_v20 }
 0xabb   :  { %v558_v56 = vpop.permute.xlu0 %557 }
 0xabc   :  { %v560_v57 = vmul.f32 %v1726_v55, %v558_v56 }
 0xabe   :  { %562 = vrot.lane.b32.xlu0 %v560_v57, %s1757_s12 }
 0xb30   :  { %v563_v59 = vpop.permute.xlu0 %562 }
 0xb31   :  { %v565_v60 = vadd.f32 %v563_v59, %v547_v47 }
 0xb33   :  { %1727 = vtanh.f32 %v565_v60 }
 0xb3d   :  { %v1728_v61 = vpop.eup %1727 }
 0xb3e   :  { %569 = vrot.lane.b32.xlu0 %v1728_v61, %s1758_s13 }
 0xbb0   :  { %v570_v63 = vpop.permute.xlu0 %569 }
 0xbb1   :  { %v572_v2 = vmul.f32 %v570_v63, %v567_v62 }
 0xbb3   :  { %v2014_v6 = vadd.f32 %v573_v0, %v572_v2 }
 0xbb5   :  { %v576_v7 = vsel %vm20_vm1, %v575_v3, %v2014_v6 }
 0xbb6   :  { %1481 = vmatmul.mubr.msk.f32.vlgmr.msra.gmra.mrb[6].mxu1 %vm31_vm2, %v576_v7 }
 0xbb7   :  { %1657 = vmatpush3.bf16.msra.mxu1 %v1892_v40  ;;  %1512 = vmatprep.mubr.msk.f32.mxu1 %vm1754_vm0, %v1755_v4 }
 0xbb8   :  { %1658 = vmatprep.subr.bf16.mxu1 %v1753_v1 }
 0xbbb   :  { %1660 = vmatpush3.bf16.msra.mxu1 %v1903_v45 }
 0xbbc   :  { %1661 = vmatprep.subr.bf16.mxu1 %v1753_v1 }
 0xbbf   :  { %1663 = vmatpush3.bf16.msra.mxu1 %v1915_v48 }
 0xbc0   :  { %1664 = vmatprep.subr.bf16.mxu1 %v1753_v1 }
 0xbc3   :  { %1666 = vmatpush3.bf16.msra.mxu1 %v1926_v51 }
 0xbc4   :  { %1679 = vmatprep.subr.bf16.mxu1 %v1753_v1 }
 0xc89   :  { %v646_v9 = vpop.f32.mrb[6].mxu1 }
 0xc8a   :  { %v647_v10 = vadd.f32 %v646_v9, %v1850_v18  ;;  %v1482_v12 = vpop.f32.mrb[7].mxu1 }
 0xc8c   :  { %v650_v13 = vsel %vm105_vm3, %v647_v10, -inf }
 0xc8d   :  { %651 = vmax.xlane.f32.xlu1 %v650_v13 }
 0xd1a   :  { %v652_v15 = vpop.xlane.xlu1 %651 }
 0xd1b   :  { %v653_v17 = vsub.f32 %v647_v10, %v652_v15 }
 0xd1d   :  { %v654_v19 = vmul.f32 1.442695, %v653_v17 }
 0xd1f   :  { %1729 = vpow2.f32 %v654_v19 }
 0xd29   :  { %v1730_v21 = vpop.eup %1729 }
 0xd2a   :  { %v656_v16 = vsel %vm105_vm3, %v1730_v21, 0.0 }
 0xd2b   :  { %657 = vadd.xlane.f32.xlu0 %v656_v16 }
 0xdb8   :  { %v658_v22 = vpop.xlane.xlu0 %657 }
 0xdb9   :  { %1731 = vrcp.f32 %v658_v22 }
 0xdc3   :  { %v1732_v23 = vpop.eup %1731 }
 0xdc4   :  { %v660_v25 = vmul.f32 %v1732_v23, %v1730_v21 }
 0xdc6   :  { %662 = vrot.lane.b32.xlu1 %v660_v25, %s1756_s18  ;;  %v1120_v26 = vrot.slane %v660_v25, 6 }
 0xdc8   :  { %v2037_v28 = vsel %vm1114_vm6, %v1124_v27, %v1120_v26  ;;  %v1128_v27 = vld [vmem:[%s2138_s1 + $0xb0] sm:$0xff] }
 0xe38   :  { %v663_v29 = vpop.permute.xlu1 %662 }
 0xe39   :  { %v665_v30 = vsel %vm20_vm1, %v575_v3, %v663_v29 }
 0xe3a   :  { %1494 = vmatmul.mubr.msk.f32.vlgmr.msra.gmra.mrb[6].mxu0 %vm128_vm4, %v665_v30  ;;  %v1130_v30 = vld [vmem:[%s2138_s1 + $0xc0] sm:$0xff] }
 0xe3b   :  { %1669 = vmatpush3.bf16.msra.mxu0 %v1792_v5  ;;  %1531 = vmatprep.mubr.msk.f32.mxu0 %vm1754_vm0, %v1755_v4 }
 0xe3c   :  { %1670 = vmatprep.subr.bf16.mxu0 %v1753_v1 }
 0xe3f   :  { %1672 = vmatpush3.bf16.msra.mxu0 %v1804_v8 }
 0xe40   :  { %1673 = vmatprep.subr.bf16.mxu0 %v1753_v1 }
 0xe43   :  { %1675 = vmatpush3.bf16.msra.mxu0 %v1814_v11 }
 0xe44   :  { %1676 = vmatprep.subr.bf16.mxu0 %v1753_v1 }
 0xe47   :  { %1678 = vmatpush3.bf16.msra.mxu0 %v1824_v14 }
 0xe48   :  { %1685 = vmatprep.subr.bf16.mxu0 %v1753_v1 }
 0xf0d   :  { %v735_v37 = vpop.f32.mrb[6].mxu0 }
 0xf0e   :  { %v736_v5 = vadd.f32 %v735_v37, %v1933_v52  ;;  %v1495_v32 = vpop.f32.mrb[7].mxu0 }
 0xf10   :  { %v739_v34 = vmax.f32 %v736_v5, 0.0 }
 0xf12   :  { %v740_v36 = vsel %vm20_vm1, %v739_v34, %v2014_v6 }
 0xf13   :  { %1513 = vmatmul.mubr.msk.f32.vlgmr.msra.gmra.mrb[8].mxu1 %vm31_vm2, %v740_v36  ;;  %v1104_v36 = vrot.slane %v2014_v6, 7 }
 0xf14   :  { %1681 = vmatpush3.bf16.msra.mxu1 %v1864_v31  ;;  %1544 = vmatprep.mubr.msk.f32.mxu1 %vm1754_vm0, %v1755_v4 }
 0xf15   :  { %1682 = vmatprep.subr.bf16.mxu1 %v1753_v1 }
 0xf18   :  { %1684 = vmatpush3.bf16.msra.mxu1 %v1870_v33 }
 0xf19   :  { %1542 = vmatprep.subr.mxu1 %v1755_v4 }
 0xf1c   :  { %1543 = vmatpush3.msra.mxu1 %v1878_v35 }
 0xf1d   :  { %1697 = vmatprep.subr.bf16.mxu1 %v1753_v1 }
 0xfe6   :  { %v810_v8 = vpop.f32.mrb[8].mxu1 }
 0xfe7   :  { %v811_v11 = vadd.f32 %v810_v8, %v1950_v58  ;;  %v1514_v14 = vpop.f32.mrb[9].mxu1 }
 0xfe9   :  { %821 = vrot.lane.b32.xlu1 %v811_v11, %s1756_s18  ;;  %v1254_v31 = vmul.f32 -1.442695, %v811_v11 }
 0xfeb   :  { %1733 = vpow2.f32 %v1254_v31 }
 0xff5   :  { %v1734_v38 = vpop.eup %1733 }
 0xff6   :  { %v817_v39 = vadd.f32 1.0, %v1734_v38 }
 0xff8   :  { %1735 = vrcp.f32 %v817_v39  ;;  %v1113_v39 = vsel %vm1112_vm5, %v1960_v20, %v1104_v36 }
0x1002   :  { %v1736_v41 = vpop.eup %1735 }
0x1003   :  { %v831_v46 = vsub.f32 1.0, %v1736_v41  ;;  %v837_v49 = vmul.f32 %v1736_v41, %v2014_v6  ;;  %v1259_v6 = vld [vmem:[%s2137_s2 + $0x3] ss:$0 sm:$0xff] }
0x105b   :  { %v822_v42 = vpop.permute.xlu1 %821 }
0x105c   :  { %v824_v33 = vmul.f32 %v1736_v41, %v822_v42 }
0x105e   :  { %826 = vrot.lane.b32.xlu1 %v824_v33, %s1757_s12 }
0x10d0   :  { %v827_v43 = vpop.permute.xlu1 %826 }
0x10d1   :  { %v829_v35 = vadd.f32 %v827_v43, %v811_v11 }
0x10d3   :  { %1737 = vtanh.f32 %v829_v35 }
0x10dd   :  { %v1738_v44 = vpop.eup %1737 }
0x10de   :  { %833 = vrot.lane.b32.xlu1 %v1738_v44, %s1758_s13 }
0x1150   :  { %v834_v47 = vpop.permute.xlu1 %833 }
0x1151   :  { %v836_v50 = vmul.f32 %v834_v47, %v831_v46 }
0x1153   :  { %v2071_v54 = vadd.f32 %v837_v49, %v836_v50 }
0x1155   :  { %v840_v55 = vsel %vm20_vm1, %v839_v53, %v2071_v54  ;;  %v1107_v14 = vrot.slane %v2071_v54, 6 }
0x1156   :  { %1532 = vmatmul.mubr.msk.f32.vlgmr.msra.gmra.mrb[8].mxu0 %vm31_vm2, %v840_v55 }
0x1157   :  { %1687 = vmatpush3.bf16.msra.mxu0 %v1892_v40  ;;  %1563 = vmatprep.mubr.msk.f32.mxu0 %vm1754_vm0, %v1755_v4 }
0x1158   :  { %1688 = vmatprep.subr.bf16.mxu0 %v1753_v1 }
0x115b   :  { %1690 = vmatpush3.bf16.msra.mxu0 %v1903_v45 }
0x115c   :  { %1691 = vmatprep.subr.bf16.mxu0 %v1753_v1 }
0x115f   :  { %1693 = vmatpush3.bf16.msra.mxu0 %v1915_v48 }
0x1160   :  { %1694 = vmatprep.subr.bf16.mxu0 %v1753_v1 }
0x1163   :  { %1696 = vmatpush3.bf16.msra.mxu0 %v1926_v51 }
0x1229   :  { %v910_v56 = vpop.f32.mrb[8].mxu0 }
0x122a   :  { %v911_v57 = vadd.f32 %v910_v56, %v1850_v18  ;;  %v1533_v59 = vpop.f32.mrb[9].mxu0 }
0x122c   :  { %v914_v40 = vsel %vm105_vm3, %v911_v57, -inf }
0x122d   :  { %915 = vmax.xlane.f32.xlu1 %v914_v40 }
0x12ba   :  { %v916_v60 = vpop.xlane.xlu1 %915 }
0x12bb   :  { %v917_v61 = vsub.f32 %v911_v57, %v916_v60 }
0x12bd   :  { %v918_v62 = vmul.f32 1.442695, %v917_v61 }
0x12bf   :  { %1739 = vpow2.f32 %v918_v62 }
0x12c9   :  { %v1740_v45 = vpop.eup %1739 }
0x12ca   :  { %v920_v63 = vsel %vm105_vm3, %v1740_v45, 0.0 }
0x12cb   :  { %921 = vadd.xlane.f32.xlu0 %v920_v63 }
0x1358   :  { %v922_v48 = vpop.xlane.xlu0 %921 }
0x1359   :  { %1741 = vrcp.f32 %v922_v48 }
0x1363   :  { %v1742_v0 = vpop.eup %1741 }
0x1364   :  { %v924_v2 = vmul.f32 %v1742_v0, %v1740_v45 }
0x1366   :  { %926 = vrot.lane.b32.xlu0 %v924_v2, %s1756_s18  ;;  %v1122_v18 = vrot.slane %v924_v2, 5 }
0x1368   :  { %v2091_v51 = vsel %vm1116_vm7, %v2037_v28, %v1122_v18  ;;  %v1129_v28 = vld [vmem:[%s2138_s1 + $0xb8] sm:$0xff] }
0x1369   :  { %v1701_v37 = vpack.c.bf16 %v1130_v30, %v1129_v28 }
0x13d8   :  { %v927_v3 = vpop.permute.xlu0 %926 }
0x13d9   :  { %v929_v7 = vsel %vm20_vm1, %v839_v53, %v927_v3 }
0x13da   :  { %1545 = vmatmul.mubr.msk.f32.vlgmr.msra.gmra.mrb[10].mxu1 %vm128_vm4, %v929_v7 }
0x13db   :  { %1574 = vmatprep.mubr.msk.f32.mxu1 %vm1754_vm0, %v1755_v4 }
0x14ad   :  { %v999_v9 = vpop.f32.mrb[10].mxu1 }
0x14ae   :  { %v1000_v10 = vadd.f32 %v999_v9, %v1933_v52  ;;  %v1546_v12 = vpop.f32.mrb[11].mxu1 }
0x14b0   :  { %v1003_v13 = vmax.f32 %v1000_v10, 0.0 }
0x14b2   :  { %v1004_v15 = vsel %vm20_vm1, %v1003_v13, %v2071_v54 }
0x14b3   :  { %1564 = vmatmul.mubr.msk.f32.vlgmr.msra.gmra.mrb[10].mxu0 %vm31_vm2, %v1004_v15 }
0x1586   :  { %v1074_v17 = vpop.f32.mrb[10].mxu0 }
0x1587   :  { %v1075_v19 = vadd.f32 %v1074_v17, %v1950_v58  ;;  %v1565_v21 = vpop.f32.mrb[11].mxu0  ;;  %v1127_v58 = vld [vmem:[%s2138_s1 + $0xa8] sm:$0xff] }
0x1588   :  { %v1698_v29 = vpack.c.bf16 %v1128_v27, %v1127_v58 }
0x1589   :  { %1085 = vrot.lane.b32.xlu0 %v1075_v19, %s1756_s18  ;;  %v1258_v16 = vmul.f32 -1.442695, %v1075_v19 }
0x158a   :  { %1699 = vmatpush3.bf16.msra.mxu1 %v1698_v29 }
0x158b   :  { %1743 = vpow2.f32 %v1258_v16  ;;  %1700 = vmatprep.subr.bf16.mxu1 %v1753_v1  ;;  %v1115_v1 = vsel %vm1114_vm6, %v1113_v39, %v1107_v14 }
0x158e   :  { %1702 = vmatpush3.bf16.msra.mxu1 %v1701_v37 }
0x1595   :  { %v1744_v22 = vpop.eup %1743 }
0x1596   :  { %v1081_v4 = vadd.f32 1.0, %v1744_v22 }
0x1598   :  { %1745 = vrcp.f32 %v1081_v4 }
0x15a2   :  { %v1746_v23 = vpop.eup %1745 }
0x15a3   :  { %v1095_v32 = vsub.f32 1.0, %v1746_v23  ;;  %v1101_v8 = vmul.f32 %v1746_v23, %v2071_v54 }
0x15fb   :  { %v1086_v52 = vpop.permute.xlu0 %1085 }
0x15fc   :  { %v1088_v24 = vmul.f32 %v1746_v23, %v1086_v52 }
0x15fe   :  { %1090 = vrot.lane.b32.xlu0 %v1088_v24, %s1757_s12 }
0x1670   :  { %v1091_v25 = vpop.permute.xlu0 %1090 }
0x1671   :  { %v1093_v26 = vadd.f32 %v1091_v25, %v1075_v19 }
0x1673   :  { %1747 = vtanh.f32 %v1093_v26 }
0x167d   :  { %v1748_v5 = vpop.eup %1747 }
0x167e   :  { %1097 = vrot.lane.b32.xlu0 %v1748_v5, %s1758_s13 }
0x16f0   :  { %v1098_v34 = vpop.permute.xlu0 %1097 }
0x16f1   :  { %v1100_v11 = vmul.f32 %v1098_v34, %v1095_v32 }
0x16f3   :  { %v1102_v31 = vadd.f32 %v1101_v8, %v1100_v11 }
0x16f5   :  { %v1110_v38 = vrot.slane %v1102_v31, 5 }
0x16f7   :  { %v1117_v41 = vsel %vm1116_vm7, %v1115_v1, %v1110_v38 }
0x16f8   :  { %1137 = vrot.lane.b32.xlu1 %v1117_v41, %s1758_s13 }
0x176a   :  { %v1138_v42 = vpop.permute.xlu1 %1137 }
0x176b   :  { %1575 = vmatmul.mubr.msk.f32.vlgmr.msra.gmra.mrb[12].mxu1 %vm20_vm1, %v1138_v42 }
0x183e   :  { %v1207_v33 = vpop.f32.mrb[12].mxu1 }
0x183f   :  { %v1208_v43 = vadd.f32 %v1259_v6, %v1207_v33  ;;  %v1576_v35 = vpop.f32.mrb[13].mxu1 }
0x1841   :  { %v1212_v44 = vsel %vm1211_vm8, %v1208_v43, -inf }
0x1842   :  { %1213 = vmax.xlane.f32.xlu0 %v1212_v44 }
0x1858   :  { %1224 = vrot.lane.b32.xlu0 %v1117_v41, %s1756_s18 }
0x18cf   :  { %v1214_v20 = vpop.xlane.xlu0 %1213 }
0x18d0   :  { %v1215_v46 = vsub.f32 %v1208_v43, %v1214_v20 }
0x18d2   :  { %v1216_v47 = vmul.f32 1.442695, %v1215_v46 }
0x18d3   :  { %v1225_v57 = vpop.permute.xlu0 %1224 }
0x18d4   :  { %1749 = vpow2.f32 %v1216_v47 }
0x18de   :  { %v1750_v49 = vpop.eup %1749 }
0x18df   :  { %v1218_v50 = vsel %vm1211_vm8, %v1750_v49, 0.0 }
0x18e0   :  { %1219 = vadd.xlane.f32.xlu1 %v1218_v50 }
0x18f1   :  { %1228 = vrot.lane.b32.xlu1 %v2091_v51, %s1758_s13 }
0x196d   :  { %v1220_v53 = vpop.xlane.xlu1 %1219 }
0x196e   :  { %1751 = vlog2.f32 %v1220_v53 }
0x1971   :  { %v1229_v59 = vpop.permute.xlu1 %1228 }
0x1978   :  { %v1752_v54 = vpop.eup %1751 }
0x1979   :  { %v1222_v55 = vmul.f32 0.6931472, %v1752_v54 }
0x197b   :  { %v1223_v56 = vsub.f32 %v1215_v46, %v1222_v55 }
0x197d   :  { %v1231_v40 = vsel %vm31_vm2, %v1223_v56, %v1225_v57 }
0x197e   :  { %v1233_v60 = vsel %vm1232_vm9, %v1231_v40, %v1229_v59 }
0x197f   :  { %v1235_v61 = vsel %vm1234_vm10, %v1233_v60, 0.0 }
0x1980   :  { %v1237_v62 = vsel %vm1236_vm11, %v1235_v61, 0.0 }
0x1981   :  { %1238 = vst [vmem:[%s2140_s3] sm:$0xff] %v1237_v62 }

</bundles_post_ra>
